<compile_context>
chip_gen: v7x
topology: tpu7x:2x2x1
jax: 0.10.0
libtpu: 0.0.40
codegen_flags: <defaults>
</compile_context>

<pallas_src>
import functools

import jax
import jax.numpy as jnp
from jax import lax
from jax.experimental import pallas as pl
from jax.experimental.pallas import tpu as pltpu

ALPHA = 1.0
GAMMA = 2.0
IGNORE_INDEX = 255
LANES = 128
CHUNK_ROWS = 512                         # rows per inner step (bounds live temps)
_INPUT_BLOCK_BUDGET = 6 * 1024 * 1024    # bytes of (logits + targets) per grid step


def _focal_loss_kernel(logits_ref, targets_ref, out_ref, *,
                       alpha, gamma, ignore_index, chunk_rows,
                       total_pixels, mask_tail):
    num_classes, rows_tile, _ = logits_ref.shape
    n_chunks = rows_tile // chunk_rows
    ss = pl.program_id(1)

    g_int = int(gamma)
    int_gamma = float(gamma) == float(g_int) and 0 <= g_int <= 8

    def chunk_partial(r0):
        """Focal-loss sum over a (chunk_rows, 128) pixel slab, folded to (8,128)."""
        tgt = targets_ref[pl.ds(r0, chunk_rows), :].astype(jnp.int32)

        # Class axis unrolled; per-class tiles re-read straight from the VMEM
        # block (plenty of vld headroom in a mem-bound kernel) so only a few
        # (chunk_rows,128) f32 temporaries are live at once.
        # NOTE: for very large num_classes, switch this to lax.fori_loop over
        # the class axis to bound code size / compile time.
        m = logits_ref[0, pl.ds(r0, chunk_rows), :].astype(jnp.float32)
        for ci in range(1, num_classes):
            m = jnp.maximum(
                m, logits_ref[ci, pl.ds(r0, chunk_rows), :].astype(jnp.float32))

        sumexp = jnp.zeros_like(m)
        x_t = jnp.zeros_like(m)
        for ci in range(num_classes):
            xc = logits_ref[ci, pl.ds(r0, chunk_rows), :].astype(jnp.float32)
            sumexp = sumexp + jnp.exp(xc - m)
            x_t = x_t + jnp.where(tgt == ci, xc, 0.0)

        lse = m + jnp.log(sumexp)

        valid = tgt != ignore_index
        if mask_tail:
            # Mask rows/lanes past the true spatial extent (overhanging block).
            row = lax.broadcasted_iota(jnp.int32, (chunk_rows, LANES), 0)
            lane = lax.broadcasted_iota(jnp.int32, (chunk_rows, LANES), 1)
            pos = (ss * rows_tile + r0 + row) * LANES + lane
            valid = jnp.logical_and(valid, pos < total_pixels)

        ce = jnp.where(valid, lse - x_t, 0.0)
        pt = jnp.exp(-ce)
        omp = 1.0 - pt

        if int_gamma:
            # integer-exponent fast path: no pow -> no extra EUP transcendentals
            w = jnp.ones_like(omp) if g_int == 0 else omp
            for _ in range(max(0, g_int - 1)):
                w = w * omp
        else:
            w = jnp.power(jnp.maximum(omp, 0.0), jnp.float32(gamma))

        focal = w * ce
        if float(alpha) != 1.0:
            focal = jnp.float32(alpha) * focal

        if chunk_rows % 8 == 0:
            # pure elementwise fold (VPU only); reshape is layout-free.
            return jnp.sum(focal.reshape(chunk_rows // 8, 8, LANES), axis=0)
        # tiny-extent fallback (whole spatial block has < 8 rows)
        rowsum = jnp.sum(focal, axis=0, keepdims=True)           # (1,128)
        sub = lax.broadcasted_iota(jnp.int32, (8, LANES), 0)
        return jnp.where(sub == 0, rowsum, jnp.float32(0.0))

    if n_chunks == 1:
        acc = chunk_partial(0)
    else:
        acc = lax.fori_loop(
            0, n_chunks,
            lambda i, a: a + chunk_partial(
                pl.multiple_of(i * chunk_rows, chunk_rows)),
            jnp.zeros((8, LANES), jnp.float32))

    out_ref[...] = acc.reshape(out_ref.shape)


def focal_loss(logits_nchw, targets_nhw, *, alpha=ALPHA, gamma=GAMMA,
               ignore_index=IGNORE_INDEX):
    n, c, h, w = logits_nchw.shape
    s = h * w

    targets = targets_nhw.reshape(n, s)
    # uint8 targets: 4 -> 1 byte/pixel HBM traffic (classes + ignore fit in u8).
    if c <= 255 and 0 <= ignore_index <= 255:
        targets = targets.astype(jnp.uint8)
    else:
        targets = targets.astype(jnp.int32)

    logits = logits_nchw.reshape(n, c, s)

    s_pad = ((s + LANES - 1) // LANES) * LANES
    if s_pad != s:
        # TODO(synk): this pad is one extra HBM pass over logits; it only
        # triggers when H*W is not a multiple of 128 (rare for segmentation).
        logits = jnp.pad(logits, ((0, 0), (0, 0), (0, s_pad - s)))
        targets = jnp.pad(targets, ((0, 0), (0, s_pad - s)),
                          constant_values=ignore_index)
    r = s_pad // LANES

    # Pure reshapes of the contiguous NCHW buffer — no transpose, no extra
    # HBM pass; spatial axis lands lane-dense (last dim = 128).
    logits = logits.reshape(n, c, r, LANES)
    targets = targets.reshape(n, r, LANES)

    # ---- tiling -------------------------------------------------------------
    bytes_per_row = LANES * (c * logits.dtype.itemsize + targets.dtype.itemsize)
    if r <= CHUNK_ROWS:
        rows_tile = r                       # block covers the full extent
        chunk_rows = r
    else:
        k = max(1, _INPUT_BLOCK_BUDGET // (CHUNK_ROWS * bytes_per_row))
        rows_tile = min(k * CHUNK_ROWS, (r // CHUNK_ROWS) * CHUNK_ROWS)
        chunk_rows = CHUNK_ROWS
    num_ss = pl.cdiv(r, rows_tile)
    mask_tail = (r % rows_tile) != 0        # 128-lane pad is covered by ignore_index

    block_bytes = rows_tile * bytes_per_row
    vmem_limit = int(min(32 * 1024 * 1024,
                         max(16 * 1024 * 1024, 2 * block_bytes + 8 * 1024 * 1024)))

    kernel = functools.partial(
        _focal_loss_kernel,
        alpha=float(alpha), gamma=float(gamma), ignore_index=int(ignore_index),
        chunk_rows=int(chunk_rows), total_pixels=int(s), mask_tail=bool(mask_tail))

    p_pad = n * s_pad
    cost = pl.CostEstimate(
        flops=int((6 * c + 10) * p_pad),
        transcendentals=int((c + 2) * p_pad),
        bytes_accessed=int(p_pad * (c * logits.dtype.itemsize
                                    + targets.dtype.itemsize)
                           + n * num_ss * 8 * LANES * 4),
    )

    partials = pl.pallas_call(
        kernel,
        out_shape=jax.ShapeDtypeStruct((n, num_ss, 8, LANES), jnp.float32),
        grid_spec=pltpu.PrefetchScalarGridSpec(
            num_scalar_prefetch=0,
            grid=(n, num_ss),
            in_specs=[
                pl.BlockSpec((pl.Squeezed(), c, rows_tile, LANES),
                             lambda nn, ss: (nn, 0, ss, 0)),
                pl.BlockSpec((pl.Squeezed(), rows_tile, LANES),
                             lambda nn, ss: (nn, ss, 0)),
            ],
            out_specs=pl.BlockSpec((1, 1, 8, LANES),
                                   lambda nn, ss: (nn, ss, 0, 0)),
        ),
        compiler_params=pltpu.CompilerParams(
            dimension_semantics=("parallel", "parallel"),
            vmem_limit_bytes=vmem_limit),
        cost_estimate=cost,
    )(logits, targets)

    # Tiny (n, num_ss, 8, 128) final reduction + mean over ALL pixels.
    return jnp.sum(partials) / jnp.float32(n * s)


def focal_loss_ref(logits_nchw, targets_nhw, *, alpha=ALPHA, gamma=GAMMA,
                   ignore_index=IGNORE_INDEX):
    """Pure-JAX reference matching F.cross_entropy(..., reduction='none').mean()."""
    n, c, h, w = logits_nchw.shape
    x = jnp.transpose(logits_nchw, (0, 2, 3, 1)).reshape(-1, c).astype(jnp.float32)
    t = targets_nhw.reshape(-1).astype(jnp.int32)
    logp = jax.nn.log_softmax(x, axis=-1)
    safe_t = jnp.where(t == ignore_index, 0, t)
    ce = -jnp.take_along_axis(logp, safe_t[:, None], axis=-1)[:, 0]
    ce = jnp.where(t == ignore_index, 0.0, ce)
    pt = jnp.exp(-ce)
    focal = alpha * (1.0 - pt) ** gamma * ce
    return jnp.mean(focal)


if __name__ == "__main__":
    key = jax.random.PRNGKey(0)
    k1, k2, k3 = jax.random.split(key, 3)

    N, C, H, W = 2, 4, 16, 16
    logits = jax.random.normal(k1, (N, C, H, W), dtype=jnp.float32) * 2.0
    targets = jax.random.randint(k2, (N, H, W), 0, C, dtype=jnp.int32)
    # sprinkle some ignore_index positions
    ignore_mask = jax.random.uniform(k3, (N, H, W)) < 0.1
    targets = jnp.where(ignore_mask, IGNORE_INDEX, targets)

    out = focal_loss(logits, targets)
    out = jax.block_until_ready(out)

    ref = focal_loss_ref(logits, targets)
    assert jnp.allclose(out, ref, atol=1e-5, rtol=1e-5), (out, ref)

    print("KERNEL_OK")
</pallas_src>

<mosaic_0001>
module attributes {stable_mosaic.version = 11 : i64} {
  func.func @_focal_loss_kernel(%arg0: i32, %arg1: i32, %arg2: memref<1x4x2x128xf32, #tpu.memory_space<vmem>>, %arg3: memref<1x2x128xi8, #tpu.memory_space<vmem>>, %arg4: memref<1x1x8x128xf32, #tpu.memory_space<vmem>>) attributes {dimension_semantics = [#tpu.dimension_semantics<parallel>, #tpu.dimension_semantics<parallel>], iteration_bounds = array<i64: 2, 1>, scalar_prefetch = 0 : i64, scratch_operands = 0 : i64, tpu.core_type = #tpu.core_type<tc>, window_params = [{transform_indices = @transform_0, window_bounds = array<i64: 1, 4, 2, 128>}, {transform_indices = @transform_1, window_bounds = array<i64: 1, 2, 128>}, {transform_indices = @transform_2, window_bounds = array<i64: 1, 1, 8, 128>}]} {
    %c0 = arith.constant 0 : index
    %c0_0 = arith.constant 0 : index
    %c0_1 = arith.constant 0 : index
    %0 = vector.load %arg3[%c0, %c0_0, %c0_1] : memref<1x2x128xi8, #tpu.memory_space<vmem>>, vector<1x2x128xi8>
    %1 = vector.shape_cast %0 : vector<1x2x128xi8> to vector<2x128xi8>
    %2 = arith.extui %1 : vector<2x128xi8> to vector<2x128xi32>
    %c0_2 = arith.constant 0 : index
    %c0_3 = arith.constant 0 : index
    %c0_4 = arith.constant 0 : index
    %c0_5 = arith.constant 0 : index
    %3 = vector.load %arg2[%c0_2, %c0_3, %c0_4, %c0_5] : memref<1x4x2x128xf32, #tpu.memory_space<vmem>>, vector<1x1x2x128xf32>
    %4 = vector.shape_cast %3 : vector<1x1x2x128xf32> to vector<2x128xf32>
    %c0_6 = arith.constant 0 : index
    %c1 = arith.constant 1 : index
    %c0_7 = arith.constant 0 : index
    %c0_8 = arith.constant 0 : index
    %5 = vector.load %arg2[%c0_6, %c1, %c0_7, %c0_8] : memref<1x4x2x128xf32, #tpu.memory_space<vmem>>, vector<1x1x2x128xf32>
    %6 = vector.shape_cast %5 : vector<1x1x2x128xf32> to vector<2x128xf32>
    %7 = arith.maximumf %4, %6 : vector<2x128xf32>
    %c0_9 = arith.constant 0 : index
    %c2 = arith.constant 2 : index
    %c0_10 = arith.constant 0 : index
    %c0_11 = arith.constant 0 : index
    %8 = vector.load %arg2[%c0_9, %c2, %c0_10, %c0_11] : memref<1x4x2x128xf32, #tpu.memory_space<vmem>>, vector<1x1x2x128xf32>
    %9 = vector.shape_cast %8 : vector<1x1x2x128xf32> to vector<2x128xf32>
    %10 = arith.maximumf %7, %9 : vector<2x128xf32>
    %c0_12 = arith.constant 0 : index
    %c3 = arith.constant 3 : index
    %c0_13 = arith.constant 0 : index
    %c0_14 = arith.constant 0 : index
    %11 = vector.load %arg2[%c0_12, %c3, %c0_13, %c0_14] : memref<1x4x2x128xf32, #tpu.memory_space<vmem>>, vector<1x1x2x128xf32>
    %12 = vector.shape_cast %11 : vector<1x1x2x128xf32> to vector<2x128xf32>
    %13 = arith.maximumf %10, %12 : vector<2x128xf32>
    %cst = arith.constant 0.000000e+00 : f32
    %14 = vector.broadcast %cst : f32 to vector<2x128xf32>
    %cst_15 = arith.constant 0.000000e+00 : f32
    %15 = vector.broadcast %cst_15 : f32 to vector<2x128xf32>
    %c0_16 = arith.constant 0 : index
    %c0_17 = arith.constant 0 : index
    %c0_18 = arith.constant 0 : index
    %c0_19 = arith.constant 0 : index
    %16 = vector.load %arg2[%c0_16, %c0_17, %c0_18, %c0_19] : memref<1x4x2x128xf32, #tpu.memory_space<vmem>>, vector<1x1x2x128xf32>
    %17 = vector.shape_cast %16 : vector<1x1x2x128xf32> to vector<2x128xf32>
    %18 = arith.subf %17, %13 : vector<2x128xf32>
    %19 = math.exp %18 : vector<2x128xf32>
    %20 = arith.addf %14, %19 : vector<2x128xf32>
    %c0_i32 = arith.constant 0 : i32
    %21 = vector.broadcast %c0_i32 : i32 to vector<2x128xi32>
    %22 = arith.cmpi eq, %2, %21 : vector<2x128xi32>
    %cst_20 = arith.constant 0.000000e+00 : f32
    %23 = vector.broadcast %cst_20 : f32 to vector<2x128xf32>
    %24 = arith.select %22, %17, %23 : vector<2x128xi1>, vector<2x128xf32>
    %25 = arith.addf %15, %24 : vector<2x128xf32>
    %c0_21 = arith.constant 0 : index
    %c1_22 = arith.constant 1 : index
    %c0_23 = arith.constant 0 : index
    %c0_24 = arith.constant 0 : index
    %26 = vector.load %arg2[%c0_21, %c1_22, %c0_23, %c0_24] : memref<1x4x2x128xf32, #tpu.memory_space<vmem>>, vector<1x1x2x128xf32>
    %27 = vector.shape_cast %26 : vector<1x1x2x128xf32> to vector<2x128xf32>
    %28 = arith.subf %27, %13 : vector<2x128xf32>
    %29 = math.exp %28 : vector<2x128xf32>
    %30 = arith.addf %20, %29 : vector<2x128xf32>
    %c1_i32 = arith.constant 1 : i32
    %31 = vector.broadcast %c1_i32 : i32 to vector<2x128xi32>
    %32 = arith.cmpi eq, %2, %31 : vector<2x128xi32>
    %cst_25 = arith.constant 0.000000e+00 : f32
    %33 = vector.broadcast %cst_25 : f32 to vector<2x128xf32>
    %34 = arith.select %32, %27, %33 : vector<2x128xi1>, vector<2x128xf32>
    %35 = arith.addf %25, %34 : vector<2x128xf32>
    %c0_26 = arith.constant 0 : index
    %c2_27 = arith.constant 2 : index
    %c0_28 = arith.constant 0 : index
    %c0_29 = arith.constant 0 : index
    %36 = vector.load %arg2[%c0_26, %c2_27, %c0_28, %c0_29] : memref<1x4x2x128xf32, #tpu.memory_space<vmem>>, vector<1x1x2x128xf32>
    %37 = vector.shape_cast %36 : vector<1x1x2x128xf32> to vector<2x128xf32>
    %38 = arith.subf %37, %13 : vector<2x128xf32>
    %39 = math.exp %38 : vector<2x128xf32>
    %40 = arith.addf %30, %39 : vector<2x128xf32>
    %c2_i32 = arith.constant 2 : i32
    %41 = vector.broadcast %c2_i32 : i32 to vector<2x128xi32>
    %42 = arith.cmpi eq, %2, %41 : vector<2x128xi32>
    %cst_30 = arith.constant 0.000000e+00 : f32
    %43 = vector.broadcast %cst_30 : f32 to vector<2x128xf32>
    %44 = arith.select %42, %37, %43 : vector<2x128xi1>, vector<2x128xf32>
    %45 = arith.addf %35, %44 : vector<2x128xf32>
    %c0_31 = arith.constant 0 : index
    %c3_32 = arith.constant 3 : index
    %c0_33 = arith.constant 0 : index
    %c0_34 = arith.constant 0 : index
    %46 = vector.load %arg2[%c0_31, %c3_32, %c0_33, %c0_34] : memref<1x4x2x128xf32, #tpu.memory_space<vmem>>, vector<1x1x2x128xf32>
    %47 = vector.shape_cast %46 : vector<1x1x2x128xf32> to vector<2x128xf32>
    %48 = arith.subf %47, %13 : vector<2x128xf32>
    %49 = math.exp %48 : vector<2x128xf32>
    %50 = arith.addf %40, %49 : vector<2x128xf32>
    %c3_i32 = arith.constant 3 : i32
    %51 = vector.broadcast %c3_i32 : i32 to vector<2x128xi32>
    %52 = arith.cmpi eq, %2, %51 : vector<2x128xi32>
    %cst_35 = arith.constant 0.000000e+00 : f32
    %53 = vector.broadcast %cst_35 : f32 to vector<2x128xf32>
    %54 = arith.select %52, %47, %53 : vector<2x128xi1>, vector<2x128xf32>
    %55 = arith.addf %45, %54 : vector<2x128xf32>
    %56 = math.log %50 : vector<2x128xf32>
    %57 = arith.addf %13, %56 : vector<2x128xf32>
    %c255_i32 = arith.constant 255 : i32
    %58 = vector.broadcast %c255_i32 : i32 to vector<2x128xi32>
    %59 = arith.cmpi ne, %2, %58 : vector<2x128xi32>
    %60 = arith.subf %57, %55 : vector<2x128xf32>
    %cst_36 = arith.constant 0.000000e+00 : f32
    %61 = vector.broadcast %cst_36 : f32 to vector<2x128xf32>
    %62 = arith.select %59, %60, %61 : vector<2x128xi1>, vector<2x128xf32>
    %cst_37 = arith.constant 0.000000e+00 : f32
    %63 = vector.broadcast %cst_37 : f32 to vector<2x128xf32>
    %64 = arith.subf %63, %62 : vector<2x128xf32>
    %65 = math.exp %64 : vector<2x128xf32>
    %cst_38 = arith.constant 1.000000e+00 : f32
    %66 = vector.broadcast %cst_38 : f32 to vector<2x128xf32>
    %67 = arith.subf %66, %65 : vector<2x128xf32>
    %68 = arith.mulf %67, %67 : vector<2x128xf32>
    %69 = arith.mulf %68, %62 : vector<2x128xf32>
    %cst_39 = arith.constant dense<0.000000e+00> : vector<128xf32>
    %70 = vector.multi_reduction <add>, %69, %cst_39 [0] : vector<2x128xf32> to vector<128xf32>
    %71 = vector.shape_cast %70 : vector<128xf32> to vector<1x128xf32>
    %72 = tpu.iota {dimensions = array<i32: 0>} : vector<8x128xi32>
    %c0_i32_40 = arith.constant 0 : i32
    %73 = vector.broadcast %c0_i32_40 : i32 to vector<8x128xi32>
    %74 = arith.cmpi eq, %72, %73 : vector<8x128xi32>
    %cst_41 = arith.constant 0.000000e+00 : f32
    %75 = vector.shape_cast %71 : vector<1x128xf32> to vector<1x128xf32>
    %76 = vector.broadcast %75 : vector<1x128xf32> to vector<8x128xf32>
    %77 = vector.broadcast %cst_41 : f32 to vector<8x128xf32>
    %78 = arith.select %74, %76, %77 : vector<8x128xi1>, vector<8x128xf32>
    %79 = vector.shape_cast %78 : vector<8x128xf32> to vector<1x1x8x128xf32>
    %c0_42 = arith.constant 0 : index
    %c0_43 = arith.constant 0 : index
    %c0_44 = arith.constant 0 : index
    %c0_45 = arith.constant 0 : index
    %80 = vector.load %arg4[%c0_42, %c0_43, %c0_44, %c0_45] : memref<1x1x8x128xf32, #tpu.memory_space<vmem>>, vector<1x1x8x128xf32>
    tpu.vector_store %arg4[%c0_42, %c0_43, %c0_44, %c0_45], %79 {strides = array<i32>} : memref<1x1x8x128xf32, #tpu.memory_space<vmem>>, vector<1x1x8x128xf32>,
    return
  }
  func.func @transform_0(%arg0: i32, %arg1: i32) -> (i32, i32, i32, i32) {
    %c0_i32 = arith.constant 0 : i32
    %c0_i32_0 = arith.constant 0 : i32
    %c0_i32_1 = arith.constant 0 : i32
    return %arg0, %c0_i32, %arg1, %c0_i32_0 : i32, i32, i32, i32
  }
  func.func @transform_1(%arg0: i32, %arg1: i32) -> (i32, i32, i32) {
    %c0_i32 = arith.constant 0 : i32
    %c0_i32_0 = arith.constant 0 : i32
    return %arg0, %arg1, %c0_i32 : i32, i32, i32
  }
  func.func @transform_2(%arg0: i32, %arg1: i32) -> (i32, i32, i32, i32) {
    %c0_i32 = arith.constant 0 : i32
    %c0_i32_0 = arith.constant 0 : i32
    %c0_i32_1 = arith.constant 0 : i32
    return %arg0, %arg1, %c0_i32, %c0_i32_0 : i32, i32, i32, i32
  }
}

</mosaic_0001>

<bundles_post_ra>
// kernel: tpu_custom_call.1
= control target key start
LH: loop header
LB: loop body
LE: loop exit
PB: predicated region body
PF: predicated region fallthrough
CT: control target
= control target key end

     0   :  { %7 = vsyncpa [#allocation3], 0  ;;  %s787_s0 = inlined_call_operand.hbm [shape: f32[2,4,2,128], index: 0, kind: input, shape index: {}]   ;;  %s788_s1 = inlined_call_operand.vmem [shape: u8[2,2,128], index: 1, kind: input, shape index: {}]   ;;  %s789_s2 = inlined_call_operand.hbm [shape: f32[2,1,8,128], index: 2, kind: output, shape index: {}]  }
   0x1   :  { %9 = vsyncpa [#allocation3 + $0x1], 0 }
   0x2   :  { %10 = vsyncpa [#allocation4], 0 }
   0x3   :  { %12 = vsyncpa [#allocation4 + $0x1], 0  ;;  %s605_s9 = smov 0   ;;  %s607_s10 = smov 0  }
   0x4   :  { %s609_s11 = smov 0   ;;  %s611_s12 = smov 0  }
   0x5   :  { %s613_s13 = smov 0   ;;  %s615_s14 = smov 0  }
   0x6 LB: > { %s378_s15 = sadd.s32 4294967295, %s584_s14   ;;  %s379_s16 = sadd.s32 4294967294, %s584_s14   ;;  %s584_s14 = sphi %s615_s14, %s18_s14   ;;  %s580_s13 = sphi %s613_s13, %s804_s13   ;;  %s576_s12 = sphi %s611_s12, %s803_s12   ;;  %s572_s11 = sphi %s609_s11, %s802_s11   ;;  %s568_s10 = sphi %s607_s10, %s801_s10   ;;  %s564_s9 = sphi %s605_s9, %s800_s9  }
   0x7   : > { %s30_s17 = sadd.s32 1, %s580_s13  ;;  %s39_s18 = sadd.s32 1, %s572_s11 }
   0x8   : > { %p32_p0 = scmp.ge.s32.totalorder %s30_s17, 2  ;;  %p46_p1 = scmp.ne.s32.totalorder %s572_s11, %s568_s10 }
   0x9   : > { %p47_p2 = scmp.eq.s32.totalorder %s584_s14, 0  ;;  %p52_p3 = scmp.ne.s32.totalorder %s568_s10, %s564_s9 }
   0xa   : > { %s806_s17 = smov (%p32_p0, %s30_s17), 0  ;;  %p53_p5 = scmp.eq.s32.totalorder %s378_s15, 0 }
   0xb   : > { %p646_p4 = por %p47_p2, %p46_p1  ;;  %s34_s20 = ssub.s32 %s580_s13, %s806_s17 }
   0xc   : > { %p106_p6 = scmp.eq.s32.totalorder %s378_s15, 1  ;;  %p37_p7 = scmp.eq.s32.totalorder %s34_s20, 0 }
   0xd   : > { %p652_p8 = por %p53_p5, %p52_p3  ;;  %p112_p10 = scmp.eq.s32.totalorder %s379_s16, 1 }
   0xe   : > { %p656_p9 = por %p106_p6, %p46_p1  ;;  %p408_p13 = scmp.lt.s32.totalorder %s584_s14, 2 }
   0xf   : > { %s661_s23 = scalar_select %p37_p7, %s572_s11, %s39_s18  }
  0x10   : > { %s793_s22 = scalar_select %p656_p9, 1, 0 }
  0x11   : > { %p663_p11 = por %p112_p10, %p52_p3  ;;  %s132_s25 = sand.u32 1, %s572_s11  }
  0x12   : > { %s382_s26 = sshll.u32 %s132_s25, 3  ;;  %s395_s27 = sshll.u32 %s580_s13, 7 }
  0x13   : > { %s794_s24 = scalar_select %p663_p11, 1, 0 }
  0x14   : > { %s674_s30 = scalar_lea.hbm %s787_s0, %s395_s27  ;;  %s136_s3 = scalar_lea.vmem [#allocation2], %s382_s26 }
  0x15   : > { %s144_s4 = sshll.u32 %s136_s3, 4  ;;  %p680_p0 = pnand %p408_p13, %p646_p4  ;;  %s676_s4 = int_to_ptr.vmem [resolvable:$true] %s144_s4 }
  0x16   : > { %s685_s6 = scalar_lea.sflag [#allocation3], %s132_s25  ;;  %s472_s7 = scalar_lea.hbm %s674_s30, 128 }
  0x17   : > { %p473_p2 = scmp.ne.s32.totalorder %s674_s30, %s472_s7  ;;  %p474_p3 = pneg %p680_p0 }
  0x18   : > { %s477_s16 = scalar_lea.hbm %s787_s0, 256  ;;  %p478_p4 = scmp.lt.u32.totalorder %s674_s30, %s787_s0 }
  0x19   : > { %p475_p5 = pnand %p474_p3, %p473_p2  ;;  %p479_p7 = scmp.lt.u32.totalorder %s477_s16, %s472_s7 }
  0x1a   : > { %p481_p13 = scmp.lt.u32.totalorder %s472_s7, %s674_s30 }
  0x1b   : > { %p476_p6 = pneg %p475_p5  ;;  %p480_p10 = por %p479_p7, %p478_p4 }
  0x1d   : > { %p482_p12 = por %p481_p13, %p480_p10 }
  0x1f   : > { %p483_p1 = pnand %p482_p12, %p476_p6 }
  0x21   : > { %486 = shalt.err (!%p483_p1)
}
  0x22   : > { %s487_s20 = scalar_lea.vmem %s676_s4, 128  ;;  %s586_s25 = smov [#allocation2]  }
  0x23   : > { %p488_p2 = scmp.ne.s32.totalorder %s676_s4, %s487_s20  ;;  %s492_s26 = sshll.u32 %s586_s25, 4  ;;  %s493_s26 = int_to_ptr.vmem [resolvable:$false] %s492_s26 }
  0x24   : > { %s494_s27 = scalar_lea.vmem %s493_s26, 256  ;;  %p495_p9 = scmp.lt.s32.totalorder %s676_s4, %s493_s26 }
  0x25   : > { %p490_p5 = pnand %p488_p2, %p474_p3  ;;  %p496_p4 = scmp.lt.s32.totalorder %s494_s27, %s487_s20 }
  0x27   : > { %p491_p11 = pneg %p490_p5  ;;  %p497_p7 = por %p496_p4, %p495_p9 }
  0x29   : > { %p498_p10 = pnand %p497_p7, %p491_p11 }
  0x2b   : > { %501 = shalt.err (!%p498_p10)
}
  0x2c   : > { %s587_s28 = smov 32   ;;  %s588_s29 = smov 2  }
  0x2d   : > { %403 = dma.hbm_to_vmem [thread:$0]  (!%p680_p0), %s674_s30, 128, %s676_s4, %s685_s6, %s587_s28, %s587_s28, %s588_s29  }
  0x2e   : > { %p161_p12 = scmp.lt.s32.totalorder %s584_s14, 3  ;;  %p796_p1 = scmp.ge.s32.totalorder %s584_s14, 1 }
  0x30   : > { %p162_p3 = pnand %p796_p1, %p161_p12 }
  0x31   : > { %s717_s3 = sand.u32 (!%p162_p3), 1, %s568_s10  }
  0x32   : > { %165 = sbr.rel (%p162_p3) target bundleno = 154 (0x9a), region = 28  ;;  %s386_s7 = sshll.u32 (!%p162_p3), %s717_s3, 3 }
  0x33   : > { %s168_s8 = scalar_lea.sflag (!%p162_p3), [#allocation3], %s717_s3  ;;  %s171_s15 = scalar_lea.vmem (!%p162_p3), [#allocation2], %s386_s7 }
  0x39   : > { %555 = dma.done.wait (%p652_p8), %s168_s8, 128  }
  0x3a   : > { %557 = vsyncadd (%p652_p8), %s168_s8, 4294967168  ;;  %v207_v0 = vld [vmem:[%s171_s15] sm:$0x3]  ;;  %v388_v1 = vld [vmem:[%s171_s15 + $0x2] sm:$0x3]  ;;  %p198_p9 = scmp.lt.s32.totalorder %s576_s12, 1  ;;  %v265_v45 = vlaneseq }
  0x3b   : > { %v210_v2 = vmax.f32 %v207_v0, %v388_v1  ;;  %v389_v3 = vld [vmem:[%s171_s15 + $0x4] sm:$0x3]  ;;  %v390_v4 = vld [vmem:[%s171_s15 + $0x6] sm:$0x3]  ;;  %vm257_vm5 = vcmask 1041408   ;;  %s197_s6 = scalar_lea.vmem [#allocation5], %s386_s7 }
  0x3c   : > { %s199_s30 = scalar_select %p198_p9, %s576_s12, 1  ;;  %v266_v48 = vshrl.u32 %v265_v45, 7 }
  0x3d   : > { %v213_v5 = vmax.f32 %v210_v2, %v389_v3  ;;  %s285_s16 = sshll.u32 %s197_s6, 4  ;;  %s392_s18 = sshll.u32 %s576_s12, 7  ;;  %s735_s16 = int_to_ptr.vmem [resolvable:$true] %s285_s16 }
  0x3e   : > { %s203_s5 = scalar_lea.vmem %s788_s1, %s199_s30  ;;  %vm267_vm6 = vcmp.eq.s32.totalorder %v266_v48, 0  ;;  %s740_s25 = scalar_lea.hbm %s789_s2, %s392_s18 }
  0x3f   : > { %v216_v6 = vmax.f32 %v213_v5, %v390_v4  ;;  %v204_v15 = vld [vmem:[%s203_s5] sm:$0x1]  ;;  %s271_s26 = scalar_lea.sflag [#allocation4], %s717_s3  ;;  %s502_s27 = scalar_lea.vmem %s735_s16, 128 }
  0x40   : > { %v205_v16 = vunpack.c.0.s8 %v204_v15  ;;  %p503_p8 = scmp.ne.s32.totalorder %s735_s16, %s502_s27  ;;  %p797_p11 = scmp.ne.s32.totalorder %s793_s22, 0 }
  0x41   : > { %v217_v7 = vsub.f32 %v207_v0, %v216_v6  ;;  %v224_v8 = vsub.f32 %v388_v1, %v216_v6  ;;  %v231_v9 = vsub.f32 %v389_v3, %v216_v6  ;;  %v238_v10 = vsub.f32 %v390_v4, %v216_v6  ;;  %s589_s12 = smov [#allocation5]  }
  0x42   : > { %v206_v19 = vand.u32 255, %v205_v16  ;;  %p504_p0 = pnand %p503_p8, %p797_p11  ;;  %s506_s28 = sshll.u32 %s589_s12, 4  ;;  %s507_s28 = int_to_ptr.vmem [resolvable:$false] %s506_s28 }
  0x43   : > { %v218_v11 = vmul.f32 1.442695, %v217_v7  ;;  %v225_v12 = vmul.f32 1.442695, %v224_v8  ;;  %v232_v13 = vmul.f32 1.442695, %v231_v9  ;;  %p509_p13 = scmp.lt.s32.totalorder %s735_s16, %s507_s28 }
  0x44   : > { %v239_v14 = vmul.f32 1.442695, %v238_v10  ;;  %vm221_vm0 = vcmp.eq.s32.totalorder %v206_v19, 0  ;;  %vm228_vm1 = vcmp.eq.s32.totalorder %v206_v19, 1  ;;  %vm235_vm2 = vcmp.eq.s32.totalorder %v206_v19, 2  ;;  %p505_p6 = pneg %p504_p0  ;;  %s508_s29 = scalar_lea.vmem %s507_s28, 256 }
  0x45   : > { %460 = vpow2.f32 %v218_v11  ;;  %v222_v25 = vsel %vm221_vm0, %v207_v0, 0.0  ;;  %v229_v26 = vsel %vm228_vm1, %v388_v1, 0.0  ;;  %v236_v28 = vsel %vm235_vm2, %v389_v3, 0.0  ;;  %p510_p2 = scmp.lt.s32.totalorder %s508_s29, %s502_s27 }
  0x46   : > { %462 = vpow2.f32 %v225_v12  ;;  %v230_v27 = vadd.f32 %v229_v26, %v222_v25  ;;  %vm242_vm3 = vcmp.eq.s32.totalorder %v206_v19, 3  ;;  %vm248_vm4 = vcmp.ne.s32.totalorder %v206_v19, 255 }
  0x47   : > { %464 = vpow2.f32 %v232_v13  ;;  %v243_v30 = vsel %vm242_vm3, %v390_v4, 0.0  ;;  %p511_p5 = por %p510_p2, %p509_p13 }
  0x48   : > { %466 = vpow2.f32 %v239_v14  ;;  %v237_v29 = vadd.f32 %v236_v28, %v230_v27 }
  0x49   : > { %p512_p4 = pnand %p511_p5, %p505_p6 }
  0x4a   : > { %v244_v32 = vadd.f32 %v243_v30, %v237_v29 }
  0x4f   : > { %v461_v17 = vpop.eup %460 }
  0x50   : > { %v463_v18 = vpop.eup %462 }
  0x51   : > { %v465_v20 = vpop.eup %464  ;;  %v227_v21 = vadd.f32 %v463_v18, %v461_v17 }
  0x52   : > { %v467_v22 = vpop.eup %466 }
  0x53   : > { %v234_v23 = vadd.f32 %v465_v20, %v227_v21 }
  0x55   : > { %v241_v24 = vadd.f32 %v467_v22, %v234_v23 }
  0x57   : > { %468 = vlog2.f32 %v241_v24 }
  0x61   : > { %v469_v31 = vpop.eup %468 }
  0x62   : > { %v246_v33 = vmul.f32 0.6931472, %v469_v31 }
  0x64   : > { %v247_v34 = vadd.f32 %v246_v33, %v216_v6 }
  0x66   : > { %v249_v35 = vsub.f32 %v247_v34, %v244_v32 }
  0x68   : > { %v250_v36 = vsel %vm248_vm4, %v249_v35, 0.0 }
  0x69   : > { %v251_v37 = vsub.f32 0.0, %v250_v36 }
  0x6b   : > { %v252_v38 = vmul.f32 1.442695, %v251_v37 }
  0x6d   : > { %470 = vpow2.f32 %v252_v38 }
  0x77   : > { %v471_v39 = vpop.eup %470 }
  0x78   : > { %v254_v40 = vsub.f32 1.0, %v471_v39 }
  0x7a   : > { %v255_v41 = vmul.f32 %v254_v40, %v254_v40 }
  0x7c   : > { %v256_v42 = vmul.f32 %v255_v41, %v250_v36 }
  0x7e   : > { %v258_v43 = vsel %vm257_vm5, %v256_v42, 0.0 }
  0x7f   : > { %v259_v44 = vrot.slane %v258_v43, 4 }
  0x81   : > { %v260_v46 = vadd.f32 %v259_v44, %v258_v43 }
  0x83   : > { %v261_v47 = vrot.slane %v260_v46, 2 }
  0x85   : > { %v262_v49 = vadd.f32 %v261_v47, %v260_v46 }
  0x87   : > { %v263_v50 = vrot.slane %v262_v49, 1 }
  0x89   : > { %v264_v51 = vadd.f32 %v263_v50, %v262_v49 }
  0x8b   : > { %v268_v52 = vsel %vm267_vm6, %v264_v51, 0.0 }
  0x8c   : > { %269 = vst [vmem:[%s197_s6] sm:$0xff] %v268_v52 }
  0x8d   : > { %515 = shalt.err (!%p512_p4)
}
  0x8e   : > { %s516_s3 = scalar_lea.hbm %s740_s25, 128  ;;  %s520_s15 = scalar_lea.hbm %s789_s2, 256 }
  0x8f   : > { %p517_p7 = scmp.ne.s32.totalorder %s740_s25, %s516_s3  ;;  %p521_p1 = scmp.lt.u32.totalorder %s740_s25, %s789_s2 }
  0x90   : > { %p522_p3 = scmp.lt.u32.totalorder %s520_s15, %s516_s3  ;;  %p524_p8 = scmp.lt.u32.totalorder %s516_s3, %s740_s25 }
  0x91   : > { %p518_p10 = pnand %p517_p7, %p797_p11 }
  0x92   : > { %p523_p9 = por %p522_p3, %p521_p1 }
  0x93   : > { %p519_p12 = pneg %p518_p10 }
  0x94   : > { %p525_p0 = por %p524_p8, %p523_p9 }
  0x96   : > { %p526_p6 = pnand %p525_p0, %p519_p12 }
  0x98   : > { %529 = shalt.err (!%p526_p6)
}
  0x99   : > { %398 = dma.vmem_to_hbm [thread:$0]  (%p797_p11), %s735_s16, 128, %s740_s25, %s271_s26  }
  0x9a PF: > { %s297_s4 = sand.u32 1, %s564_s9   ;;  %p798_p13 = scmp.ne.s32.totalorder %s794_s24, 0 }
  0x9b   : > { %p799_p2 = scmp.ge.s32.totalorder %s584_s14, 2  ;;  %s298_s5 = scalar_lea.sflag [#allocation4], %s297_s4 }
  0x9d   : > { %p405_p5 = pnand %p799_p2, %p798_p13 }
  0x9f   : > { %559 = dma.done.wait (!%p405_p5), %s298_s5, 128  }
  0xa0   : > { %561 = vsyncadd (!%p405_p5), %s298_s5, 4294967168  ;;  %s18_s14 = sadd.s32 1, %s584_s14   ;;  %s800_s9 = smov %s568_s10 }
  0xa1   : > { %p15_p4 = scmp.ge.s32.totalorder %s18_s14, 4   ;;  %s801_s10 = smov %s572_s11 }
  0xa2   : > { %s802_s11 = smov %s661_s23  ;;  %s803_s12 = smov %s580_s13 }
  0xa3   : > { %s804_s13 = smov %s806_s17  ;;  %17 = sbr.rel (!%p15_p4) target bundleno = 6 (0x6), region = 79 }
  0xaa   :  { %303 = vsyncpa [#allocation3], 1 }
  0xab   :  { %305 = vsyncpa [#allocation3 + $0x1], 1 }
  0xac   :  { %306 = vsyncpa [#allocation4], 1 }
  0xad   :  { %308 = vsyncpa [#allocation4 + $0x1], 1 }

</bundles_post_ra>
